<compile_context>
chip_gen: v6e
topology: v6e:2x2x1
jax: 0.10.0
libtpu: 0.0.40
codegen_flags: <defaults>
</compile_context>

<pallas_src>
import math

import jax
import jax.numpy as jnp
from jax import lax
from jax.experimental import pallas as pl
from jax.experimental.pallas import tpu as pltpu


def _round_up(x, m):
    return ((x + m - 1) // m) * m


def _choose_tile(dim, candidates):
    """Pick the tile (candidates sorted descending) that minimizes the padded size.

    Always returns one of `candidates`; the dimension is zero-padded up to a
    multiple of the chosen tile, so there is no divisibility fallback.
    """
    best_tile, best_padded = None, None
    for c in candidates:
        padded = _round_up(dim, c)
        if best_padded is None or padded < best_padded:
            best_tile, best_padded = c, padded
    return best_tile, best_padded


def _modconv_matmul_kernel(x_ref, w_ref, d_ref, o_ref):
    """One (batch, M-tile, N-tile, K-tile) step of out[b] = im2col(s*x)[b] @ W_shared.

    x_ref : (1, TM, TK) bf16   style-scaled im2col tile
    w_ref : (TK, TN)    bf16   shared (batch-independent) weight tile
    d_ref : (1, 1, TN)  f32    per-sample demodulation row for this C_out tile
    o_ref : (1, TM, TN) f32    output tile; resident across the K grid axis
    """
    kk = pl.program_id(3)

    @pl.when(kk == 0)
    def _():
        o_ref[0] = jnp.zeros_like(o_ref[0])

    # Accumulate directly into the resident f32 output block (no scratch).
    o_ref[0] += jnp.dot(x_ref[0], w_ref[...], preferred_element_type=jnp.float32)

    @pl.when(kk == pl.num_programs(3) - 1)
    def _():
        o_ref[0] = o_ref[0] * d_ref[0]           # apply per-sample demod (f32, VPU)


def modulated_conv2d(x, style, weight, mod_weight, mod_bias, *, demodulate=True):
    """Forward of ModulatedConv2d (upsample=False, downsample=False).

    x          : (N, C_in, H, W)        float32
    style      : (N, style_dim)         float32
    weight     : (1, C_out, C_in, k, k) float32  (raw self.weight)
    mod_weight : (C_in, style_dim)      float32  (nn.Linear weight)
    mod_bias   : (C_in,)                float32  (nn.Linear bias)
    returns    : (N, C_out, H, W)       float32

    Operand-precision contract: x (after style scaling) and the shared weight are
    rounded to bfloat16; all contractions and the demod scaling accumulate in f32.
    """
    N, C_in, H, W = x.shape
    _, C_out, _, k, _ = weight.shape
    pad = k // 2
    scale = 1.0 / math.sqrt(C_in * k * k)

    # ---- style modulation (tiny, plain JAX) -------------------------------------
    s = style.astype(jnp.float32) @ mod_weight.T.astype(jnp.float32) + mod_bias  # (N, C_in)

    # ---- shared (batch-independent) weight, K-order = (kh, kw, c_in) ------------
    w0 = weight[0].astype(jnp.float32)                                  # (C_out, C_in, k, k)
    w_shared = jnp.transpose(scale * w0, (2, 3, 1, 0)).reshape(k * k * C_in, C_out)
    w_shared = w_shared.astype(jnp.bfloat16)

    # ---- demodulation as a tiny f32 matmul: O(N*C_in*C_out) ---------------------
    if demodulate:
        w2sum = jnp.sum(w0 * w0, axis=(2, 3))                           # (C_out, C_in)
        demod = lax.rsqrt((scale * scale) * (s * s) @ w2sum.T + 1e-8)   # (N, C_out)
    else:
        demod = jnp.ones((N, C_out), jnp.float32)

    # ---- im2col in bf16, with the style scale folded into x ---------------------
    x_scaled = x.astype(jnp.float32) * s[:, :, None, None]              # fold s into x
    x_nhwc = jnp.transpose(x_scaled, (0, 2, 3, 1)).astype(jnp.bfloat16)  # bf16 BEFORE im2col
    x_padded = jnp.pad(x_nhwc, ((0, 0), (pad, pad), (pad, pad), (0, 0)))
    cols = [x_padded[:, i:i + H, j:j + W, :] for i in range(k) for j in range(k)]
    x_col = jnp.stack(cols, axis=3).reshape(N, H * W, k * k * C_in)     # (N, M, K) bf16

    # ---- tile selection: pick big tiles, pad dims up to them --------------------
    M, K = H * W, k * k * C_in
    TM, Mp = _choose_tile(M, (512, 256, 128))
    TK, Kp = _choose_tile(K, (512, 256))
    TN, Cp = _choose_tile(C_out, (512, 256))

    x_col_p = jnp.pad(x_col, ((0, 0), (0, Mp - M), (0, Kp - K)))        # bf16, zeros
    w_p = jnp.pad(w_shared, ((0, Kp - K), (0, Cp - C_out)))             # bf16, zeros
    demod_p = jnp.pad(demod[:, None, :], ((0, 0), (0, 0), (0, Cp - C_out)))  # (N,1,Cp) f32

    # VMEM footprint: double-buffered bf16 inputs + resident/double-buffered f32 out.
    footprint = 2 * (TM * TK * 2 + TK * TN * 2 + TN * 4) + 2 * (TM * TN * 4)
    vmem_limit = int(min(64 * 1024 * 1024, max(2 * footprint + (4 << 20), 16 << 20)))

    grid = (N, Mp // TM, Cp // TN, Kp // TK)
    out = pl.pallas_call(
        _modconv_matmul_kernel,
        out_shape=jax.ShapeDtypeStruct((N, Mp, Cp), jnp.float32),
        grid_spec=pltpu.PrefetchScalarGridSpec(
            num_scalar_prefetch=0,
            grid=grid,
            in_specs=[
                pl.BlockSpec((1, TM, TK), lambda b, i, j, kk: (b, i, kk)),
                pl.BlockSpec((TK, TN), lambda b, i, j, kk: (kk, j)),
                pl.BlockSpec((1, 1, TN), lambda b, i, j, kk: (b, 0, j)),
            ],
            out_specs=pl.BlockSpec((1, TM, TN), lambda b, i, j, kk: (b, i, j)),
        ),
        compiler_params=pltpu.CompilerParams(
            dimension_semantics=("parallel", "parallel", "parallel", "arbitrary"),
            vmem_limit_bytes=vmem_limit,
        ),
    )(x_col_p, w_p, demod_p)

    # slice off lane/sublane padding, back to NCHW (layout glue in XLA)
    out = out[:, :M, :C_out].reshape(N, H, W, C_out)
    return jnp.transpose(out, (0, 3, 1, 2))


def _reference_f32(x, style, weight, mod_weight, mod_bias, *, demodulate=True):
    """Pure-JAX reference mirroring the PyTorch forward exactly (grouped conv, f32)."""
    N, C_in, H, W = x.shape
    _, C_out, _, k, _ = weight.shape
    scale = 1.0 / math.sqrt(C_in * k * k)

    s = style @ mod_weight.T + mod_bias
    w = scale * weight * s[:, None, :, None, None]
    if demodulate:
        demod = lax.rsqrt(jnp.sum(w * w, axis=(2, 3, 4)) + 1e-8)
        w = w * demod[:, :, None, None, None]
    w = w.reshape(N * C_out, C_in, k, k)
    xg = x.reshape(1, N * C_in, H, W)
    out = lax.conv_general_dilated(
        xg, w, window_strides=(1, 1), padding=((k // 2, k // 2),) * 2,
        dimension_numbers=("NCHW", "OIHW", "NCHW"),
        feature_group_count=N, precision=lax.Precision.HIGHEST)
    return out.reshape(N, C_out, H, W)


def _reference_bf16_matched(x, style, weight, mod_weight, mod_bias, *, demodulate=True):
    """Reference that mirrors the kernel's operand-rounding exactly (bf16 operands,
    f32 accumulation, f32 demod applied post-conv)."""
    N, C_in, H, W = x.shape
    _, C_out, _, k, _ = weight.shape
    scale = 1.0 / math.sqrt(C_in * k * k)

    s = style @ mod_weight.T + mod_bias                                  # (N, C_in) f32
    xs = (x * s[:, :, None, None]).astype(jnp.bfloat16).astype(jnp.float32)
    w_sh = (scale * weight[0]).astype(jnp.bfloat16).astype(jnp.float32)  # (C_out,C_in,k,k)
    if demodulate:
        w2sum = jnp.sum(weight[0].astype(jnp.float32) ** 2, axis=(2, 3))
        demod = lax.rsqrt((scale * scale) * (s * s) @ w2sum.T + 1e-8)    # (N, C_out)
    else:
        demod = jnp.ones((N, C_out), jnp.float32)
    out = lax.conv_general_dilated(
        xs, w_sh, window_strides=(1, 1), padding=((k // 2, k // 2),) * 2,
        dimension_numbers=("NCHW", "OIHW", "NCHW"),
        precision=lax.Precision.HIGHEST)
    return out * demod[:, :, None, None]


if __name__ == "__main__":
    key = jax.random.PRNGKey(0)
    kx, ks, kw, kmw, kmb = jax.random.split(key, 5)

    N, C_in, C_out, H, W, k, style_dim = 2, 4, 4, 16, 16, 3, 8
    x = jax.random.normal(kx, (N, C_in, H, W), dtype=jnp.float32)
    style = jax.random.normal(ks, (N, style_dim), dtype=jnp.float32)
    weight = jax.random.normal(kw, (1, C_out, C_in, k, k), dtype=jnp.float32)
    mod_weight = jax.random.normal(kmw, (C_in, style_dim),
                                   dtype=jnp.float32) / math.sqrt(style_dim)
    mod_bias = 1.0 + 0.1 * jax.random.normal(kmb, (C_in,), dtype=jnp.float32)

    out = modulated_conv2d(x, style, weight, mod_weight, mod_bias, demodulate=True)
    out = jax.block_until_ready(out)

    # primary correctness check: reference with identical bf16 operand rounding
    ref_bf16 = jax.block_until_ready(
        _reference_bf16_matched(x, style, weight, mod_weight, mod_bias, demodulate=True))
    # sanity check: full-f32 PyTorch-equivalent reference (looser tol due to bf16 operands)
    ref_f32 = jax.block_until_ready(
        _reference_f32(x, style, weight, mod_weight, mod_bias, demodulate=True))

    assert out.shape == (N, C_out, H, W)
    assert jnp.max(jnp.abs(out - ref_bf16)) < 1e-3
    assert jnp.max(jnp.abs(out - ref_f32)) < 1e-1

    print("KERNEL_OK")
</pallas_src>

<mosaic_0001>
module attributes {stable_mosaic.version = 11 : i64} {
  func.func @_modconv_matmul_kernel(%arg0: i32, %arg1: i32, %arg2: i32, %arg3: i32, %arg4: memref<1x256x256xbf16, #tpu.memory_space<vmem>>, %arg5: memref<256x256xbf16, #tpu.memory_space<vmem>>, %arg6: memref<1x1x256xf32, #tpu.memory_space<vmem>>, %arg7: memref<1x256x256xf32, #tpu.memory_space<vmem>>) attributes {dimension_semantics = [#tpu.dimension_semantics<parallel>, #tpu.dimension_semantics<parallel>, #tpu.dimension_semantics<parallel>, #tpu.dimension_semantics<arbitrary>], iteration_bounds = array<i64: 2, 1, 1, 1>, scalar_prefetch = 0 : i64, scratch_operands = 0 : i64, tpu.core_type = #tpu.core_type<tc>, window_params = [{transform_indices = @transform_0, window_bounds = array<i64: 1, 256, 256>}, {transform_indices = @transform_1, window_bounds = array<i64: 256, 256>}, {transform_indices = @transform_2, window_bounds = array<i64: 1, 1, 256>}, {transform_indices = @transform_3, window_bounds = array<i64: 1, 256, 256>}]} {
    %c0_i32 = arith.constant 0 : i32
    %0 = arith.cmpi eq, %arg3, %c0_i32 : i32
    %1 = arith.extui %0 : i1 to i32
    %c0_i32_0 = arith.constant 0 : i32
    %2 = arith.cmpi ne, %1, %c0_i32_0 : i32
    scf.if %2 {
      %cst_13 = arith.constant 0.000000e+00 : f32
      %16 = vector.broadcast %cst_13 : f32 to vector<256x256xf32>
      %c0_14 = arith.constant 0 : index
      %c0_15 = arith.constant 0 : index
      %c0_16 = arith.constant 0 : index
      %17 = vector.load %arg7[%c0_14, %c0_15, %c0_16] : memref<1x256x256xf32, #tpu.memory_space<vmem>>, vector<1x256x256xf32>
      %18 = vector.shape_cast %17 : vector<1x256x256xf32> to vector<256x256xf32>
      %19 = vector.shape_cast %16 : vector<256x256xf32> to vector<1x256x256xf32>
      tpu.vector_store %arg7[%c0_14, %c0_15, %c0_16], %19 {strides = array<i32>} : memref<1x256x256xf32, #tpu.memory_space<vmem>>, vector<1x256x256xf32>,
    } else {
    }
    %c0 = arith.constant 0 : index
    %c0_1 = arith.constant 0 : index
    %c0_2 = arith.constant 0 : index
    %3 = vector.load %arg7[%c0, %c0_1, %c0_2] : memref<1x256x256xf32, #tpu.memory_space<vmem>>, vector<1x256x256xf32>
    %4 = vector.shape_cast %3 : vector<1x256x256xf32> to vector<256x256xf32>
    %c0_3 = arith.constant 0 : index
    %c0_4 = arith.constant 0 : index
    %c0_5 = arith.constant 0 : index
    %5 = vector.load %arg4[%c0_3, %c0_4, %c0_5] : memref<1x256x256xbf16, #tpu.memory_space<vmem>>, vector<1x256x256xbf16>
    %6 = vector.shape_cast %5 : vector<1x256x256xbf16> to vector<256x256xbf16>
    %c0_6 = arith.constant 0 : index
    %c0_7 = arith.constant 0 : index
    %7 = vector.load %arg5[%c0_6, %c0_7] : memref<256x256xbf16, #tpu.memory_space<vmem>>, vector<256x256xbf16>
    %cst = arith.constant dense<0.000000e+00> : vector<256x256xf32>
    %8 = tpu.matmul %6, %7, %cst {dimension_numbers = #tpu.dot_dimension_numbers<[1], [0], [0], [1], [0, 0, 1, 1], [], []>} : vector<256x256xbf16>, vector<256x256xbf16>, vector<256x256xf32> -> vector<256x256xf32>
    %9 = arith.addf %4, %8 : vector<256x256xf32>
    %c0_8 = arith.constant 0 : index
    %c0_9 = arith.constant 0 : index
    %c0_10 = arith.constant 0 : index
    %10 = vector.load %arg7[%c0_8, %c0_9, %c0_10] : memref<1x256x256xf32, #tpu.memory_space<vmem>>, vector<1x256x256xf32>
    %11 = vector.shape_cast %10 : vector<1x256x256xf32> to vector<256x256xf32>
    %12 = vector.shape_cast %9 : vector<256x256xf32> to vector<1x256x256xf32>
    tpu.vector_store %arg7[%c0_8, %c0_9, %c0_10], %12 {strides = array<i32>} : memref<1x256x256xf32, #tpu.memory_space<vmem>>, vector<1x256x256xf32>,
    %c0_i32_11 = arith.constant 0 : i32
    %13 = arith.cmpi eq, %arg3, %c0_i32_11 : i32
    %14 = arith.extui %13 : i1 to i32
    %c0_i32_12 = arith.constant 0 : i32
    %15 = arith.cmpi ne, %14, %c0_i32_12 : i32
    scf.if %15 {
      %c0_13 = arith.constant 0 : index
      %c0_14 = arith.constant 0 : index
      %c0_15 = arith.constant 0 : index
      %16 = vector.load %arg7[%c0_13, %c0_14, %c0_15] : memref<1x256x256xf32, #tpu.memory_space<vmem>>, vector<1x256x256xf32>
      %17 = vector.shape_cast %16 : vector<1x256x256xf32> to vector<256x256xf32>
      %c0_16 = arith.constant 0 : index
      %c0_17 = arith.constant 0 : index
      %c0_18 = arith.constant 0 : index
      %18 = vector.load %arg6[%c0_16, %c0_17, %c0_18] : memref<1x1x256xf32, #tpu.memory_space<vmem>>, vector<1x1x256xf32>
      %19 = vector.shape_cast %18 : vector<1x1x256xf32> to vector<1x256xf32>
      %20 = vector.broadcast %19 : vector<1x256xf32> to vector<256x256xf32>
      %21 = arith.mulf %17, %20 : vector<256x256xf32>
      %c0_19 = arith.constant 0 : index
      %c0_20 = arith.constant 0 : index
      %c0_21 = arith.constant 0 : index
      %22 = vector.load %arg7[%c0_19, %c0_20, %c0_21] : memref<1x256x256xf32, #tpu.memory_space<vmem>>, vector<1x256x256xf32>
      %23 = vector.shape_cast %22 : vector<1x256x256xf32> to vector<256x256xf32>
      %24 = vector.shape_cast %21 : vector<256x256xf32> to vector<1x256x256xf32>
      tpu.vector_store %arg7[%c0_19, %c0_20, %c0_21], %24 {strides = array<i32>} : memref<1x256x256xf32, #tpu.memory_space<vmem>>, vector<1x256x256xf32>,
    } else {
    }
    return
  }
  func.func @transform_0(%arg0: i32, %arg1: i32, %arg2: i32, %arg3: i32) -> (i32, i32, i32) {
    %c0_i32 = arith.constant 0 : i32
    return %arg0, %arg1, %arg3 : i32, i32, i32
  }
  func.func @transform_1(%arg0: i32, %arg1: i32, %arg2: i32, %arg3: i32) -> (i32, i32) {
    %c0_i32 = arith.constant 0 : i32
    return %arg3, %arg2 : i32, i32
  }
  func.func @transform_2(%arg0: i32, %arg1: i32, %arg2: i32, %arg3: i32) -> (i32, i32, i32) {
    %c0_i32 = arith.constant 0 : i32
    %c0_i32_0 = arith.constant 0 : i32
    return %arg0, %c0_i32, %arg2 : i32, i32, i32
  }
  func.func @transform_3(%arg0: i32, %arg1: i32, %arg2: i32, %arg3: i32) -> (i32, i32, i32) {
    %c0_i32 = arith.constant 0 : i32
    return %arg0, %arg1, %arg2 : i32, i32, i32
  }
}

</mosaic_0001>

<bundles_post_ra>
// kernel: tpu_custom_call.1
= control target key start
LH: loop header
LB: loop body
LE: loop exit
PB: predicated region body
PF: predicated region fallthrough
CT: control target
= control target key end

     0   :  { %8 = vsyncpa [#allocation3], 0  ;;  %s2377_s0 = inlined_call_operand.hbm [shape: bf16[2,256,256], index: 0, kind: input, shape index: {}]   ;;  %s2378_s1 = inlined_call_operand.hbm [shape: bf16[256,256], index: 1, kind: input, shape index: {}]   ;;  %s2379_s2 = inlined_call_operand.hbm [shape: f32[2,1,256], index: 2, kind: input, shape index: {}]   ;;  %s2380_s3 = inlined_call_operand.hbm [shape: f32[2,256,256], index: 3, kind: output, shape index: {}]  }
   0x1   :  { %10 = vsyncpa [#allocation3 + $0x1], 0 }
   0x2   :  { %11 = vsyncpa [#allocation6], 0 }
   0x3   :  { %12 = vsyncpa [#allocation4], 0 }
   0x4   :  { %14 = vsyncpa [#allocation4 + $0x1], 0  ;;  %s1999_s12 = smov 0   ;;  %s2001_s13 = smov 0  }
   0x5   :  { %s2003_s14 = smov 0   ;;  %s2005_s15 = smov 0  }
   0x6   :  { %s2007_s16 = smov 0   ;;  %s2009_s17 = smov 0  }
   0x7 LB: > { %s46_s18 = sadd.s32 1, %s1965_s16  ;;  %s57_s19 = sadd.s32 1, %s1957_s14  ;;  %s1969_s17 = sphi %s2009_s17, %s20_s17   ;;  %s1965_s16 = sphi %s2007_s16, %s2404_s16   ;;  %s1961_s15 = sphi %s2005_s15, %s2403_s15   ;;  %s1957_s14 = sphi %s2003_s14, %s2402_s14   ;;  %s1953_s13 = sphi %s2001_s13, %s2401_s13   ;;  %s1949_s12 = sphi %s1999_s12, %s2400_s12  }
   0x8   : > { %p48_p0 = scmp.ge.s32.totalorder %s46_s18, 2  ;;  %p64_p1 = scmp.ne.s32.totalorder %s1957_s14, %s1953_s13 }
   0x9   : > { %p65_p2 = scmp.eq.s32.totalorder %s1969_s17, 0  ;;  %p1646_p6 = scmp.lt.s32.totalorder %s1969_s17, 2 }
   0xa   : > { %s2406_s18 = smov (%p48_p0, %s46_s18), 0  ;;  %s199_s22 = sand.u32 1, %s1969_s17  }
   0xb   : > { %p2039_p3 = por %p65_p2, %p64_p1  ;;  %s50_s21 = ssub.s32 %s1965_s16, %s2406_s18 }
   0xc   : > { %p55_p5 = scmp.eq.s32.totalorder %s50_s21, 0  ;;  %s201_s23 = sand.u32 1, %s1957_s14  }
   0xd   : > { %s1505_s25 = sshll.u32 %s201_s23, 8  ;;  %s1585_s26 = sshll.u32 %s1965_s16, 12 }
   0xe   : > { %s2050_s24 = scalar_select %p55_p5, %s1957_s14, %s57_s19  }
   0xf   : > { %s214_s29 = scalar_lea.hbm %s2377_s0, %s1585_s26  ;;  %s203_s30 = scalar_lea.vmem [#allocation2], %s1505_s25 }
  0x10   : > { %s215_s4 = sshll.u32 %s203_s30, 4  ;;  %p2060_p7 = pnand %p1646_p6, %p2039_p3  ;;  %s216_s4 = int_to_ptr.vmem [resolvable:$true] %s215_s4 }
  0x11   : > { %s2064_s6 = scalar_lea.sflag [#allocation3], %s199_s22  ;;  %s1812_s7 = scalar_lea.vmem %s216_s4, 4096 }
  0x12   : > { %p2382_p8 = pneg %p2060_p7  ;;  %p1813_p9 = scmp.ne.s32.totalorder %s216_s4, %s1812_s7 }
  0x13   : > { %s1971_s8 = smov [#allocation2]  }
  0x14   : > { %p1815_p10 = pnand %p1813_p9, %p2382_p8  ;;  %s1817_s9 = sshll.u32 %s1971_s8, 4  ;;  %s1818_s9 = int_to_ptr.vmem [resolvable:$false] %s1817_s9 }
  0x15   : > { %s1819_s10 = scalar_lea.vmem %s1818_s9, 8192  ;;  %p1820_p12 = scmp.lt.s32.totalorder %s216_s4, %s1818_s9 }
  0x16   : > { %p1816_p11 = pneg %p1815_p10  ;;  %p1821_p13 = scmp.lt.s32.totalorder %s1819_s10, %s1812_s7 }
  0x18   : > { %p1822_p0 = por %p1821_p13, %p1820_p12 }
  0x1a   : > { %p1823_p2 = pnand %p1822_p0, %p1816_p11 }
  0x1c   : > { %1826 = shalt.err (!%p1823_p2)
}
  0x1d   : > { %s2381_s11 = smov 128   ;;  %s1973_s19 = smov 8  }
  0x1e   : > { %1637 = dma.hbm_to_vmem [thread:$0]  (!%p2060_p7), %s214_s29, 4096, %s216_s4, %s2064_s6, %s2381_s11, %s2381_s11, %s1973_s19  }
  0x1f   : > { %s2078_s20 = sadd.s32 4294967295, %s1969_s17   ;;  %s1501_s21 = sadd.s32 4294967294, %s1969_s17  }
  0x20   : > { %p70_p3 = scmp.ne.s32.totalorder %s1953_s13, %s1949_s12  ;;  %p2384_p5 = scmp.eq.s32.totalorder %s2078_s20, 0 }
  0x21   : > { %p154_p6 = scmp.eq.s32.totalorder %s2078_s20, 1  ;;  %p160_p9 = scmp.eq.s32.totalorder %s1501_s21, 1 }
  0x22   : > { %p1502_p10 = scmp.ge.s32.totalorder %s1969_s17, 1  ;;  %p2088_p11 = por %p2384_p5, %p70_p3 }
  0x23   : > { %p2095_p12 = por %p154_p6, %p64_p1  ;;  %p2099_p13 = por %p160_p9, %p70_p3 }
  0x24   : > { %s2388_s22 = scalar_select %p2088_p11, 1, 0 }
  0x25   : > { %s2389_s25 = scalar_select %p2095_p12, 1, 0 }
  0x26   : > { %s2390_s26 = scalar_select %p2099_p13, 1, 0 }
  0x27   : > { %p167_p0 = scmp.lt.s32.totalorder %s1969_s17, 3  ;;  %s1974_s28 = smov [#allocation5]  }
  0x28   : > { %s185_s29 = sshll.u32 %s1974_s28, 4  ;;  %s1508_s30 = sshll.u32 %s201_s23, 1  ;;  %s186_s29 = int_to_ptr.vmem [resolvable:$true] %s185_s29 }
  0x29   : > { %p2104_p2 = pnand %p1502_p10, %p167_p0  ;;  %s1586_s4 = sshll.u32 %s1965_s16, 5 }
  0x2a   : > { %s229_s7 = scalar_lea.vmem [#allocation7], %s1508_s30  ;;  %s237_s21 = scalar_lea.hbm %s2379_s2, %s1586_s4 }
  0x2b   : > { %p1630_p4 = pneg %p2104_p2  ;;  %s239_s8 = sshll.u32 %s229_s7, 4  ;;  %s240_s8 = int_to_ptr.vmem [resolvable:$true] %s239_s8 }
  0x2c   : > { %s1838_s11 = scalar_lea.vmem %s186_s29, 4096  ;;  %p1846_p0 = scmp.lt.s32.totalorder %s186_s29, %s186_s29 }
  0x2d   : > { %p1631_p1 = pnand %p1630_p4, %p2384_p5  ;;  %p1839_p6 = scmp.ne.s32.totalorder %s186_s29, %s1838_s11 }
  0x2e   : > { %p1847_p8 = scmp.lt.s32.totalorder %s1838_s11, %s1838_s11 }
  0x2f   : > { %p1829_p3 = pneg %p1631_p1 }
  0x30   : > { %p1848_p13 = por %p1847_p8, %p1846_p0 }
  0x31   : > { %p1841_p9 = pnand %p1839_p6, %p1829_p3 }
  0x33   : > { %p1842_p10 = pneg %p1841_p9 }
  0x35   : > { %p1849_p12 = pnand %p1848_p13, %p1842_p10 }
  0x37   : > { %1852 = shalt.err (!%p1849_p12)
}
  0x38   : > { %s2392_s23 = smov 128   ;;  %s1866_s4 = scalar_lea.vmem %s240_s8, 32 }
  0x39   : > { %1633 = dma.hbm_to_vmem [thread:$0]  (!%p1631_p1), %s2378_s1, 4096, %s186_s29, [#allocation6], %s2392_s23, %s2392_s23, %s1973_s19  }
  0x3a   : > { %p1867_p4 = scmp.ne.s32.totalorder %s240_s8, %s1866_s4  ;;  %p2393_p5 = pneg %p2060_p7 }
  0x3b   : > { %s1975_s7 = smov [#allocation7]  }
  0x3c   : > { %p1869_p11 = pnand %p1867_p4, %p2393_p5  ;;  %s1871_s9 = sshll.u32 %s1975_s7, 4  ;;  %s1872_s9 = int_to_ptr.vmem [resolvable:$false] %s1871_s9 }
  0x3d   : > { %s1873_s11 = scalar_lea.vmem %s1872_s9, 64  ;;  %p1874_p8 = scmp.lt.s32.totalorder %s240_s8, %s1872_s9 }
  0x3e   : > { %p1870_p3 = pneg %p1869_p11  ;;  %p1875_p12 = scmp.lt.s32.totalorder %s1873_s11, %s1866_s4 }
  0x40   : > { %p1876_p13 = por %p1875_p12, %p1874_p8 }
  0x42   : > { %p1877_p6 = pnand %p1876_p13, %p1870_p3 }
  0x44   : > { %1880 = shalt.err (!%p1877_p6)
}
  0x45   : > { %1640 = dma.hbm_to_vmem [thread:$0]  (!%p2060_p7), %s237_s21, 32, %s240_s8, %s2064_s6  }
  0x46   : > { %248 = sbr.rel (%p2104_p2) target bundleno = 418 (0x1a2), region = 32  ;;  %s250_s19 = sand.u32 (!%p2104_p2), 1, %s2078_s20  }
  0x47   : > { %s2134_s29 = sand.u32 (!%p2104_p2), 1, %s1953_s13   ;;  %s251_s23 = scalar_lea.sflag (!%p2104_p2), [#allocation3], %s250_s19 }
  0x48   : > { %s1512_s10 = sshll.u32 (!%p2104_p2), %s2134_s29, 8  ;;  %p2394_p5 = scmp.ne.s32.totalorder (!%p2104_p2), %s2388_s22, 0 }
  0x49   : > { %s2137_s28 = scalar_lea.vmem (!%p2104_p2), [#allocation2], %s1512_s10 }
  0x4b   : > { %1932 = dma.done.wait (%p2394_p5), %s251_s23, 4096  }
  0x4c   : > { %1934 = vsyncadd (%p2394_p5), %s251_s23, 4294963200  ;;  %p2395_p7 = scmp.eq.s32.totalorder %s2078_s20, 0 }
  0x4e   : > { %1936 = dma.done.wait (%p2395_p7), [#allocation6], 4096   ;;  %p2396_p11 = pmov %p2395_p7 }
  0x4f   : > { %s1514_s5 = sshll.u32 %s2134_s29, 1 }
  0x50   : > { %1938 = vsyncadd (%p2396_p11), [#allocation6], 4294963200  ;;  %s2148_s6 = scalar_lea.vmem [#allocation7], %s1514_s5 }
  0x51   : > { %1940 = dma.done.wait (%p2394_p5), %s251_s23, 32  }
  0x52   : > { %1942 = vsyncadd (%p2394_p5), %s251_s23, 4294967264  ;;  %v1703_v0 = vld [vmem:[#allocation5 + $0x74] ss:$8 sps:$4 sm:$0xff]   ;;  %v1705_v1 = vld [vmem:[#allocation5 + $0x70] ss:$8 sps:$4 sm:$0xff]   ;;  %s1515_s20 = sshll.u32 %s2134_s29, 9 }
  0x53   : > { %818 = vmatprep.subr.bf16.mxu0 %v1703_v0  ;;  %1588 = vmatprep.subr.bf16.mxu1 %v1703_v0  ;;  %v1706_v2 = vld [vmem:[#allocation5 + $0x64] ss:$8 sps:$4 sm:$0xff]   ;;  %v1708_v3 = vld [vmem:[#allocation5 + $0x60] ss:$8 sps:$4 sm:$0xff]   ;;  %v1709_v4 = vld [vmem:[#allocation5 + $0x54] ss:$8 sps:$4 sm:$0xff]   ;;  %v1208_v0 = vlaneseq }
  0x54   : > { %819 = vmatpush1.bf16.msra.mxu0 %v1705_v1  ;;  %1604 = vmatpush1.bf16.msra.mxu1 %v1705_v1  ;;  %v1711_v5 = vld [vmem:[#allocation5 + $0x50] ss:$8 sps:$4 sm:$0xff]   ;;  %v1712_v6 = vld [vmem:[#allocation5 + $0x44] ss:$8 sps:$4 sm:$0xff]   ;;  %v1714_v7 = vld [vmem:[#allocation5 + $0x40] ss:$8 sps:$4 sm:$0xff]  }
  0x55   : > { %820 = vmatprep.subr.bf16.mxu0 %v1706_v2  ;;  %1589 = vmatprep.subr.bf16.mxu1 %v1706_v2  ;;  %v1715_v8 = vld [vmem:[#allocation5 + $0x34] ss:$8 sps:$4 sm:$0xff]   ;;  %v1717_v9 = vld [vmem:[#allocation5 + $0x30] ss:$8 sps:$4 sm:$0xff]   ;;  %v1718_v10 = vld [vmem:[#allocation5 + $0x24] ss:$8 sps:$4 sm:$0xff]  }
  0x56   : > { %v1720_v11 = vld [vmem:[#allocation5 + $0x20] ss:$8 sps:$4 sm:$0xff]   ;;  %v1721_v12 = vld [vmem:[#allocation5 + $0x14] ss:$8 sps:$4 sm:$0xff]   ;;  %v1753_v13 = vld [vmem:[%s2137_s28 + $0x4] ss:$8 sps:$4 sm:$0xff]  }
  0x57   : > { %v1723_v14 = vld [vmem:[#allocation5 + $0x10] ss:$8 sps:$4 sm:$0xff]   ;;  %v1756_v15 = vld [vmem:[%s2137_s28 + $0x84] ss:$8 sps:$4 sm:$0xff]   ;;  %850 = vmatprep.mubr.bf16.mxu0 %v1753_v13  ;;  %v1726_v17 = vld [vmem:[#allocation5] ss:$8 sps:$4 sm:$0xff]  }
  0x58   : > { %821 = vmatpush1.bf16.msra.mxu0 %v1708_v3  ;;  %1605 = vmatpush1.bf16.msra.mxu1 %v1708_v3  ;;  %v1724_v16 = vld [vmem:[#allocation5 + $0x4] ss:$8 sps:$4 sm:$0xff]   ;;  %v1727_v18 = vld [vmem:[#allocation5 + $0xf4] ss:$8 sps:$4 sm:$0xff]   ;;  %v1729_v19 = vld [vmem:[#allocation5 + $0xf0] ss:$8 sps:$4 sm:$0xff]  }
  0x59   : > { %822 = vmatprep.subr.bf16.mxu0 %v1709_v4  ;;  %1590 = vmatprep.subr.bf16.mxu1 %v1709_v4  ;;  %v1730_v20 = vld [vmem:[#allocation5 + $0xe4] ss:$8 sps:$4 sm:$0xff]   ;;  %v1732_v21 = vld [vmem:[#allocation5 + $0xe0] ss:$8 sps:$4 sm:$0xff]   ;;  %v1733_v22 = vld [vmem:[#allocation5 + $0xd4] ss:$8 sps:$4 sm:$0xff]  }
  0x5a   : > { %930 = vmatprep.mubr.bf16.mxu1 %v1756_v15  ;;  %v1735_v23 = vld [vmem:[#allocation5 + $0xd0] ss:$8 sps:$4 sm:$0xff]   ;;  %v1736_v24 = vld [vmem:[#allocation5 + $0xc4] ss:$8 sps:$4 sm:$0xff]   ;;  %v1738_v25 = vld [vmem:[#allocation5 + $0xc0] ss:$8 sps:$4 sm:$0xff]  }
  0x5b   : > { %v1739_v26 = vld [vmem:[#allocation5 + $0xb4] ss:$8 sps:$4 sm:$0xff]   ;;  %v1741_v27 = vld [vmem:[#allocation5 + $0xb0] ss:$8 sps:$4 sm:$0xff]   ;;  %v1742_v28 = vld [vmem:[#allocation5 + $0xa4] ss:$8 sps:$4 sm:$0xff]  }
  0x5c   : > { %823 = vmatpush1.bf16.msra.mxu0 %v1711_v5  ;;  %1606 = vmatpush1.bf16.msra.mxu1 %v1711_v5  ;;  %v1744_v29 = vld [vmem:[#allocation5 + $0xa0] ss:$8 sps:$4 sm:$0xff]   ;;  %v1745_v30 = vld [vmem:[#allocation5 + $0x94] ss:$8 sps:$4 sm:$0xff]   ;;  %v1747_v31 = vld [vmem:[#allocation5 + $0x90] ss:$8 sps:$4 sm:$0xff]  }
  0x5d   : > { %824 = vmatprep.subr.bf16.mxu0 %v1712_v6  ;;  %1591 = vmatprep.subr.bf16.mxu1 %v1712_v6  ;;  %v1748_v32 = vld [vmem:[#allocation5 + $0x84] ss:$8 sps:$4 sm:$0xff]   ;;  %v1750_v33 = vld [vmem:[#allocation5 + $0x80] ss:$8 sps:$4 sm:$0xff]   ;;  %v1757_v36 = vld [vmem:[%s2137_s28 + $0x14] ss:$8 sps:$4 sm:$0xff]  }
  0x5e   : > { %v1751_v34 = vld [vmem:[%s2137_s28] ss:$8 sps:$4 sm:$0xff]   ;;  %v1759_v37 = vld [vmem:[%s2137_s28 + $0x94] ss:$8 sps:$4 sm:$0xff]   ;;  %v1761_v38 = vld [vmem:[%s2137_s28 + $0x10] ss:$8 sps:$4 sm:$0xff]  }
  0x5f   : > { %v1754_v35 = vld [vmem:[%s2137_s28 + $0x80] ss:$8 sps:$4 sm:$0xff]   ;;  %v1762_v39 = vld [vmem:[%s2137_s28 + $0x90] ss:$8 sps:$4 sm:$0xff]   ;;  %v1763_v40 = vld [vmem:[%s2137_s28 + $0x24] ss:$8 sps:$4 sm:$0xff]  }
  0x60   : > { %825 = vmatpush1.bf16.msra.mxu0 %v1714_v7  ;;  %1607 = vmatpush1.bf16.msra.mxu1 %v1714_v7  ;;  %v1765_v41 = vld [vmem:[%s2137_s28 + $0xa4] ss:$8 sps:$4 sm:$0xff]   ;;  %v1767_v42 = vld [vmem:[%s2137_s28 + $0x20] ss:$8 sps:$4 sm:$0xff]   ;;  %v1769_v44 = vld [vmem:[%s2137_s28 + $0x34] ss:$8 sps:$4 sm:$0xff]  }
  0x61   : > { %826 = vmatprep.subr.bf16.mxu0 %v1715_v8  ;;  %1592 = vmatprep.subr.bf16.mxu1 %v1715_v8  ;;  %v1768_v43 = vld [vmem:[%s2137_s28 + $0xa0] ss:$8 sps:$4 sm:$0xff]   ;;  %v1771_v45 = vld [vmem:[%s2137_s28 + $0xb4] ss:$8 sps:$4 sm:$0xff]   ;;  %v1773_v46 = vld [vmem:[%s2137_s28 + $0x30] ss:$8 sps:$4 sm:$0xff]  }
  0x62   : > { %v1774_v47 = vld [vmem:[%s2137_s28 + $0xb0] ss:$8 sps:$4 sm:$0xff]   ;;  %v1775_v48 = vld [vmem:[%s2137_s28 + $0x44] ss:$8 sps:$4 sm:$0xff]   ;;  %v1779_v50 = vld [vmem:[%s2137_s28 + $0x40] ss:$8 sps:$4 sm:$0xff]  }
  0x63   : > { %v1777_v49 = vld [vmem:[%s2137_s28 + $0xc4] ss:$8 sps:$4 sm:$0xff]   ;;  %v1780_v51 = vld [vmem:[%s2137_s28 + $0xc0] ss:$8 sps:$4 sm:$0xff]   ;;  %v1781_v52 = vld [vmem:[%s2137_s28 + $0x54] ss:$8 sps:$4 sm:$0xff]  }
  0x64   : > { %827 = vmatpush1.bf16.msra.mxu0 %v1717_v9  ;;  %1608 = vmatpush1.bf16.msra.mxu1 %v1717_v9  ;;  %v1783_v53 = vld [vmem:[%s2137_s28 + $0xd4] ss:$8 sps:$4 sm:$0xff]   ;;  %v1785_v54 = vld [vmem:[%s2137_s28 + $0x50] ss:$8 sps:$4 sm:$0xff]   ;;  %v1787_v56 = vld [vmem:[%s2137_s28 + $0x64] ss:$8 sps:$4 sm:$0xff]  }
  0x65   : > { %828 = vmatprep.subr.bf16.mxu0 %v1718_v10  ;;  %1593 = vmatprep.subr.bf16.mxu1 %v1718_v10  ;;  %v1786_v55 = vld [vmem:[%s2137_s28 + $0xd0] ss:$8 sps:$4 sm:$0xff]   ;;  %v1789_v57 = vld [vmem:[%s2137_s28 + $0xe4] ss:$8 sps:$4 sm:$0xff]   ;;  %v1791_v58 = vld [vmem:[%s2137_s28 + $0x60] ss:$8 sps:$4 sm:$0xff]  }
  0x66   : > { %v1792_v59 = vld [vmem:[%s2137_s28 + $0xe0] ss:$8 sps:$4 sm:$0xff]   ;;  %v1793_v60 = vld [vmem:[%s2137_s28 + $0x74] ss:$8 sps:$4 sm:$0xff]   ;;  %v1797_v62 = vld [vmem:[%s2137_s28 + $0x70] ss:$8 sps:$4 sm:$0xff]  }
  0x67   : > { %v1795_v61 = vld [vmem:[%s2137_s28 + $0xf4] ss:$8 sps:$4 sm:$0xff]   ;;  %v1798_v63 = vld [vmem:[%s2137_s28 + $0xf0] ss:$8 sps:$4 sm:$0xff]   ;;  %v1209_v1 = vshrl.u32 %v1208_v0, 7  ;;  %s2194_s22 = scalar_lea.vmem [#allocation8], %s1515_s20 }
  0x68   : > { %829 = vmatpush1.bf16.msra.mxu0 %v1720_v11  ;;  %1609 = vmatpush1.bf16.msra.mxu1 %v1720_v11  ;;  %v1206_v3 = vld [vmem:[%s2148_s6] sm:$0x3]  ;;  %s1587_s27 = sshll.u32 %s1961_s15, 13  ;;  %s1365_s8 = sshll.u32 %s2194_s22, 4  ;;  %s2323_s8 = int_to_ptr.vmem [resolvable:$true] %s1365_s8 }
  0x69   : > { %830 = vmatprep.subr.bf16.mxu0 %v1721_v12  ;;  %1594 = vmatprep.subr.bf16.mxu1 %v1721_v12  ;;  %v1210_v2 = vsub.s32 0, %v1209_v1  ;;  %v1214_v4 = vsub.s32 1, %v1209_v1  ;;  %s2321_s4 = scalar_lea.hbm %s2380_s3, %s1587_s27  ;;  %s1347_s15 = scalar_lea.sflag [#allocation4], %s2134_s29 }
  0x6a   : > { %s1881_s7 = scalar_lea.vmem %s2323_s8, 8192  ;;  %p2397_p1 = scmp.ne.s32.totalorder %s2389_s25, 0 }
  0x6b   : > { %v2188_v5 = vrot.slane %v1206_v3, %v1210_v2  ;;  %v2190_v8 = vrot.slane %v1206_v3, %v1214_v4  ;;  %p1882_p2 = scmp.ne.s32.totalorder %s2323_s8, %s1881_s7  ;;  %s1976_s9 = smov [#allocation8]  }
  0x6c   : > { %831 = vmatpush1.bf16.msra.mxu0 %v1723_v14  ;;  %1610 = vmatpush1.bf16.msra.mxu1 %v1723_v14  ;;  %s1885_s11 = sshll.u32 %s1976_s9, 4  ;;  %s1886_s11 = int_to_ptr.vmem [resolvable:$false] %s1885_s11 }
  0x6d   : > { %832 = vmatprep.subr.bf16.mxu0 %v1724_v16  ;;  %1595 = vmatprep.subr.bf16.mxu1 %v1724_v16  ;;  %p1883_p9 = pnand %p1882_p2, %p2397_p1  ;;  %s1887_s19 = scalar_lea.vmem %s1886_s11, 16384 }
  0x6e   : > { %p1888_p0 = scmp.lt.s32.totalorder %s2323_s8, %s1886_s11  ;;  %p1889_p4 = scmp.lt.s32.totalorder %s1887_s19, %s1881_s7 }
  0x6f   : > { %p1884_p10 = pneg %p1883_p9 }
  0x70   : > { %833 = vmatpush1.bf16.msra.mxu0 %v1726_v17  ;;  %1611 = vmatpush1.bf16.msra.mxu1 %v1726_v17  ;;  %p1890_p3 = por %p1889_p4, %p1888_p0 }
  0x71   : > { %834 = vmatprep.subr.bf16.mxu0 %v1727_v18  ;;  %1596 = vmatprep.subr.bf16.mxu1 %v1727_v18 }
  0x72   : > { %p1891_p8 = pnand %p1890_p3, %p1884_p10 }
  0x74   : > { %835 = vmatpush2.bf16.msra.mxu0 %v1729_v19  ;;  %1612 = vmatpush2.bf16.msra.mxu1 %v1729_v19 }
  0x75   : > { %836 = vmatprep.subr.bf16.mxu0 %v1730_v20  ;;  %1597 = vmatprep.subr.bf16.mxu1 %v1730_v20 }
  0x78   : > { %837 = vmatpush2.bf16.msra.mxu0 %v1732_v21  ;;  %1613 = vmatpush2.bf16.msra.mxu1 %v1732_v21 }
  0x79   : > { %838 = vmatprep.subr.bf16.mxu0 %v1733_v22  ;;  %1598 = vmatprep.subr.bf16.mxu1 %v1733_v22 }
  0x7c   : > { %839 = vmatpush2.bf16.msra.mxu0 %v1735_v23  ;;  %1614 = vmatpush2.bf16.msra.mxu1 %v1735_v23 }
  0x7d   : > { %840 = vmatprep.subr.bf16.mxu0 %v1736_v24  ;;  %1599 = vmatprep.subr.bf16.mxu1 %v1736_v24 }
  0x80   : > { %841 = vmatpush2.bf16.msra.mxu0 %v1738_v25  ;;  %1615 = vmatpush2.bf16.msra.mxu1 %v1738_v25 }
  0x81   : > { %842 = vmatprep.subr.bf16.mxu0 %v1739_v26  ;;  %1600 = vmatprep.subr.bf16.mxu1 %v1739_v26 }
  0x84   : > { %843 = vmatpush2.bf16.msra.mxu0 %v1741_v27  ;;  %1616 = vmatpush2.bf16.msra.mxu1 %v1741_v27 }
  0x85   : > { %844 = vmatprep.subr.bf16.mxu0 %v1742_v28  ;;  %1601 = vmatprep.subr.bf16.mxu1 %v1742_v28 }
  0x88   : > { %845 = vmatpush2.bf16.msra.mxu0 %v1744_v29  ;;  %1617 = vmatpush2.bf16.msra.mxu1 %v1744_v29 }
  0x89   : > { %846 = vmatprep.subr.bf16.mxu0 %v1745_v30  ;;  %1602 = vmatprep.subr.bf16.mxu1 %v1745_v30 }
  0x8c   : > { %847 = vmatpush2.bf16.msra.mxu0 %v1747_v31  ;;  %1618 = vmatpush2.bf16.msra.mxu1 %v1747_v31 }
  0x8d   : > { %848 = vmatprep.subr.bf16.mxu0 %v1748_v32  ;;  %1603 = vmatprep.subr.bf16.mxu1 %v1748_v32 }
  0x90   : > { %849 = vmatpush2.bf16.msra.mxu0 %v1750_v33  ;;  %1619 = vmatpush2.bf16.msra.mxu1 %v1750_v33 }
  0x93   : > { %851 = vmatmul.mubr.bf16.vlgmr.msra.gmra.mxu0 %v1751_v34  ;;  %931 = vmatmul.mubr.bf16.vlgmr.msra.gmra.mxu1 %v1754_v35 }
  0x94   : > { %860 = vmatprep.mubr.bf16.mxu0 %v1757_v36  ;;  %940 = vmatprep.mubr.bf16.mxu1 %v1759_v37 }
  0x9b   : > { %861 = vmatmul.mubr.bf16.gmra.mxu0 %v1761_v38  ;;  %941 = vmatmul.mubr.bf16.gmra.mxu1 %v1762_v39 }
  0x9c   : > { %870 = vmatprep.mubr.bf16.mxu0 %v1763_v40  ;;  %950 = vmatprep.mubr.bf16.mxu1 %v1765_v41 }
  0xa3   : > { %871 = vmatmul.mubr.bf16.gmra.mxu0 %v1767_v42  ;;  %951 = vmatmul.mubr.bf16.gmra.mxu1 %v1768_v43 }
  0xa4   : > { %880 = vmatprep.mubr.bf16.mxu0 %v1769_v44  ;;  %960 = vmatprep.mubr.bf16.mxu1 %v1771_v45 }
  0xab   : > { %881 = vmatmul.mubr.bf16.gmra.mxu0 %v1773_v46  ;;  %961 = vmatmul.mubr.bf16.gmra.mxu1 %v1774_v47 }
  0xac   : > { %890 = vmatprep.mubr.bf16.mxu0 %v1775_v48  ;;  %970 = vmatprep.mubr.bf16.mxu1 %v1777_v49 }
  0xb3   : > { %891 = vmatmul.mubr.bf16.gmra.mxu0 %v1779_v50  ;;  %971 = vmatmul.mubr.bf16.gmra.mxu1 %v1780_v51 }
  0xb4   : > { %900 = vmatprep.mubr.bf16.mxu0 %v1781_v52  ;;  %980 = vmatprep.mubr.bf16.mxu1 %v1783_v53 }
  0xbb   : > { %901 = vmatmul.mubr.bf16.gmra.mxu0 %v1785_v54  ;;  %981 = vmatmul.mubr.bf16.gmra.mxu1 %v1786_v55 }
  0xbc   : > { %910 = vmatprep.mubr.bf16.mxu0 %v1787_v56  ;;  %990 = vmatprep.mubr.bf16.mxu1 %v1789_v57 }
  0xc3   : > { %911 = vmatmul.mubr.bf16.gmra.mxu0 %v1791_v58  ;;  %991 = vmatmul.mubr.bf16.gmra.mxu1 %v1792_v59 }
  0xc4   : > { %920 = vmatprep.mubr.bf16.mxu0 %v1793_v60  ;;  %1000 = vmatprep.mubr.bf16.mxu1 %v1795_v61 }
  0xcb   : > { %921 = vmatmul.mubr.bf16.gmra.mxu0 %v1797_v62  ;;  %1001 = vmatmul.mubr.bf16.gmra.mxu1 %v1798_v63 }
 0x153   : > { %v852_v6 = vpop.f32.mrf.mxu0  ;;  %v932_v7 = vpop.f32.mrf.mxu1 }
 0x154   : > { %v1218_v11 = vmul.f32 %v2188_v5, %v852_v6  ;;  %v1250_v12 = vmul.f32 %v2188_v5, %v932_v7 }
 0x155   : > { %v854_v9 = vpop.f32.mrf.mxu0  ;;  %v934_v10 = vpop.f32.mrf.mxu1 }
 0x156   : > { %1282 = vst [vmem:[%s2194_s22] sm:$0xff] %v1218_v11  ;;  %1314 = vst [vmem:[%s2194_s22 + $0x100] sm:$0xff] %v1250_v12  ;;  %v1219_v15 = vmul.f32 %v2190_v8, %v854_v9  ;;  %v1251_v16 = vmul.f32 %v2190_v8, %v934_v10 }
 0x157   : > { %v856_v13 = vpop.f32.mrf.mxu0  ;;  %v936_v14 = vpop.f32.mrf.mxu1 }
 0x158   : > { %1283 = vst [vmem:[%s2194_s22 + $0x8] sm:$0xff] %v1219_v15  ;;  %1315 = vst [vmem:[%s2194_s22 + $0x108] sm:$0xff] %v1251_v16  ;;  %v1220_v19 = vmul.f32 %v2188_v5, %v856_v13  ;;  %v1252_v20 = vmul.f32 %v2188_v5, %v936_v14 }
 0x159   : > { %v858_v17 = vpop.f32.mrf.mxu0  ;;  %v938_v18 = vpop.f32.mrf.mxu1 }
 0x15a   : > { %1284 = vst [vmem:[%s2194_s22 + $0x10] sm:$0xff] %v1220_v19  ;;  %1316 = vst [vmem:[%s2194_s22 + $0x110] sm:$0xff] %v1252_v20  ;;  %v1221_v23 = vmul.f32 %v2190_v8, %v858_v17  ;;  %v1253_v24 = vmul.f32 %v2190_v8, %v938_v18 }
 0x15b   : > { %v862_v21 = vpop.f32.mrf.mxu0  ;;  %v942_v22 = vpop.f32.mrf.mxu1 }
 0x15c   : > { %1285 = vst [vmem:[%s2194_s22 + $0x18] sm:$0xff] %v1221_v23  ;;  %1317 = vst [vmem:[%s2194_s22 + $0x118] sm:$0xff] %v1253_v24  ;;  %v1222_v27 = vmul.f32 %v2188_v5, %v862_v21  ;;  %v1254_v28 = vmul.f32 %v2188_v5, %v942_v22 }
 0x15d   : > { %v864_v25 = vpop.f32.mrf.mxu0  ;;  %v944_v26 = vpop.f32.mrf.mxu1 }
 0x15e   : > { %1286 = vst [vmem:[%s2194_s22 + $0x20] sm:$0xff] %v1222_v27  ;;  %1318 = vst [vmem:[%s2194_s22 + $0x120] sm:$0xff] %v1254_v28  ;;  %v1223_v31 = vmul.f32 %v2190_v8, %v864_v25  ;;  %v1255_v32 = vmul.f32 %v2190_v8, %v944_v26 }
 0x15f   : > { %v866_v29 = vpop.f32.mrf.mxu0  ;;  %v946_v30 = vpop.f32.mrf.mxu1 }
 0x160   : > { %1287 = vst [vmem:[%s2194_s22 + $0x28] sm:$0xff] %v1223_v31  ;;  %1319 = vst [vmem:[%s2194_s22 + $0x128] sm:$0xff] %v1255_v32  ;;  %v1224_v35 = vmul.f32 %v2188_v5, %v866_v29  ;;  %v1256_v36 = vmul.f32 %v2188_v5, %v946_v30 }
 0x161   : > { %v868_v33 = vpop.f32.mrf.mxu0  ;;  %v948_v34 = vpop.f32.mrf.mxu1 }
 0x162   : > { %1288 = vst [vmem:[%s2194_s22 + $0x30] sm:$0xff] %v1224_v35  ;;  %1320 = vst [vmem:[%s2194_s22 + $0x130] sm:$0xff] %v1256_v36  ;;  %v1225_v39 = vmul.f32 %v2190_v8, %v868_v33  ;;  %v1257_v40 = vmul.f32 %v2190_v8, %v948_v34 }
 0x163   : > { %v872_v37 = vpop.f32.mrf.mxu0  ;;  %v952_v38 = vpop.f32.mrf.mxu1 }
 0x164   : > { %1289 = vst [vmem:[%s2194_s22 + $0x38] sm:$0xff] %v1225_v39  ;;  %1321 = vst [vmem:[%s2194_s22 + $0x138] sm:$0xff] %v1257_v40  ;;  %v1226_v43 = vmul.f32 %v2188_v5, %v872_v37  ;;  %v1258_v44 = vmul.f32 %v2188_v5, %v952_v38 }
 0x165   : > { %v874_v41 = vpop.f32.mrf.mxu0  ;;  %v954_v42 = vpop.f32.mrf.mxu1 }
 0x166   : > { %1290 = vst [vmem:[%s2194_s22 + $0x40] sm:$0xff] %v1226_v43  ;;  %1322 = vst [vmem:[%s2194_s22 + $0x140] sm:$0xff] %v1258_v44  ;;  %v1227_v47 = vmul.f32 %v2190_v8, %v874_v41  ;;  %v1259_v48 = vmul.f32 %v2190_v8, %v954_v42 }
 0x167   : > { %v876_v45 = vpop.f32.mrf.mxu0  ;;  %v956_v46 = vpop.f32.mrf.mxu1 }
 0x168   : > { %1291 = vst [vmem:[%s2194_s22 + $0x48] sm:$0xff] %v1227_v47  ;;  %1323 = vst [vmem:[%s2194_s22 + $0x148] sm:$0xff] %v1259_v48  ;;  %v1228_v51 = vmul.f32 %v2188_v5, %v876_v45  ;;  %v1260_v52 = vmul.f32 %v2188_v5, %v956_v46 }
 0x169   : > { %v878_v49 = vpop.f32.mrf.mxu0  ;;  %v958_v50 = vpop.f32.mrf.mxu1 }
 0x16a   : > { %1292 = vst [vmem:[%s2194_s22 + $0x50] sm:$0xff] %v1228_v51  ;;  %1324 = vst [vmem:[%s2194_s22 + $0x150] sm:$0xff] %v1260_v52  ;;  %v1229_v55 = vmul.f32 %v2190_v8, %v878_v49  ;;  %v1261_v56 = vmul.f32 %v2190_v8, %v958_v50 }
 0x16b   : > { %v882_v53 = vpop.f32.mrf.mxu0  ;;  %v962_v54 = vpop.f32.mrf.mxu1 }
 0x16c   : > { %1293 = vst [vmem:[%s2194_s22 + $0x58] sm:$0xff] %v1229_v55  ;;  %1325 = vst [vmem:[%s2194_s22 + $0x158] sm:$0xff] %v1261_v56  ;;  %v1230_v59 = vmul.f32 %v2188_v5, %v882_v53  ;;  %v1262_v60 = vmul.f32 %v2188_v5, %v962_v54 }
 0x16d   : > { %v884_v57 = vpop.f32.mrf.mxu0  ;;  %v964_v58 = vpop.f32.mrf.mxu1 }
 0x16e   : > { %1294 = vst [vmem:[%s2194_s22 + $0x60] sm:$0xff] %v1230_v59  ;;  %1326 = vst [vmem:[%s2194_s22 + $0x160] sm:$0xff] %v1262_v60  ;;  %v1231_v63 = vmul.f32 %v2190_v8, %v884_v57  ;;  %v1263_v0 = vmul.f32 %v2190_v8, %v964_v58 }
 0x16f   : > { %v886_v61 = vpop.f32.mrf.mxu0  ;;  %v966_v62 = vpop.f32.mrf.mxu1 }
 0x170   : > { %1295 = vst [vmem:[%s2194_s22 + $0x68] sm:$0xff] %v1231_v63  ;;  %1327 = vst [vmem:[%s2194_s22 + $0x168] sm:$0xff] %v1263_v0  ;;  %v1232_v3 = vmul.f32 %v2188_v5, %v886_v61  ;;  %v1264_v4 = vmul.f32 %v2188_v5, %v966_v62 }
 0x171   : > { %v888_v1 = vpop.f32.mrf.mxu0  ;;  %v968_v2 = vpop.f32.mrf.mxu1 }
 0x172   : > { %1296 = vst [vmem:[%s2194_s22 + $0x70] sm:$0xff] %v1232_v3  ;;  %1328 = vst [vmem:[%s2194_s22 + $0x170] sm:$0xff] %v1264_v4  ;;  %v1233_v9 = vmul.f32 %v2190_v8, %v888_v1  ;;  %v1265_v10 = vmul.f32 %v2190_v8, %v968_v2 }
 0x173   : > { %v892_v6 = vpop.f32.mrf.mxu0  ;;  %v972_v7 = vpop.f32.mrf.mxu1 }
 0x174   : > { %1297 = vst [vmem:[%s2194_s22 + $0x78] sm:$0xff] %v1233_v9  ;;  %1329 = vst [vmem:[%s2194_s22 + $0x178] sm:$0xff] %v1265_v10  ;;  %v1234_v13 = vmul.f32 %v2188_v5, %v892_v6  ;;  %v1266_v14 = vmul.f32 %v2188_v5, %v972_v7 }
 0x175   : > { %v894_v11 = vpop.f32.mrf.mxu0  ;;  %v974_v12 = vpop.f32.mrf.mxu1 }
 0x176   : > { %1298 = vst [vmem:[%s2194_s22 + $0x80] sm:$0xff] %v1234_v13  ;;  %1330 = vst [vmem:[%s2194_s22 + $0x180] sm:$0xff] %v1266_v14  ;;  %v1235_v17 = vmul.f32 %v2190_v8, %v894_v11  ;;  %v1267_v18 = vmul.f32 %v2190_v8, %v974_v12 }
 0x177   : > { %v896_v15 = vpop.f32.mrf.mxu0  ;;  %v976_v16 = vpop.f32.mrf.mxu1 }
 0x178   : > { %1299 = vst [vmem:[%s2194_s22 + $0x88] sm:$0xff] %v1235_v17  ;;  %1331 = vst [vmem:[%s2194_s22 + $0x188] sm:$0xff] %v1267_v18  ;;  %v1236_v21 = vmul.f32 %v2188_v5, %v896_v15  ;;  %v1268_v22 = vmul.f32 %v2188_v5, %v976_v16 }
 0x179   : > { %v898_v19 = vpop.f32.mrf.mxu0  ;;  %v978_v20 = vpop.f32.mrf.mxu1 }
 0x17a   : > { %1300 = vst [vmem:[%s2194_s22 + $0x90] sm:$0xff] %v1236_v21  ;;  %1332 = vst [vmem:[%s2194_s22 + $0x190] sm:$0xff] %v1268_v22  ;;  %v1237_v25 = vmul.f32 %v2190_v8, %v898_v19  ;;  %v1269_v26 = vmul.f32 %v2190_v8, %v978_v20 }
 0x17b   : > { %v902_v23 = vpop.f32.mrf.mxu0  ;;  %v982_v24 = vpop.f32.mrf.mxu1 }
 0x17c   : > { %1301 = vst [vmem:[%s2194_s22 + $0x98] sm:$0xff] %v1237_v25  ;;  %1333 = vst [vmem:[%s2194_s22 + $0x198] sm:$0xff] %v1269_v26  ;;  %v1238_v29 = vmul.f32 %v2188_v5, %v902_v23  ;;  %v1270_v30 = vmul.f32 %v2188_v5, %v982_v24 }
 0x17d   : > { %v904_v27 = vpop.f32.mrf.mxu0  ;;  %v984_v28 = vpop.f32.mrf.mxu1 }
 0x17e   : > { %1302 = vst [vmem:[%s2194_s22 + $0xa0] sm:$0xff] %v1238_v29  ;;  %1334 = vst [vmem:[%s2194_s22 + $0x1a0] sm:$0xff] %v1270_v30  ;;  %v1239_v33 = vmul.f32 %v2190_v8, %v904_v27  ;;  %v1271_v34 = vmul.f32 %v2190_v8, %v984_v28 }
 0x17f   : > { %v906_v31 = vpop.f32.mrf.mxu0  ;;  %v986_v32 = vpop.f32.mrf.mxu1 }
 0x180   : > { %1303 = vst [vmem:[%s2194_s22 + $0xa8] sm:$0xff] %v1239_v33  ;;  %1335 = vst [vmem:[%s2194_s22 + $0x1a8] sm:$0xff] %v1271_v34  ;;  %v1240_v37 = vmul.f32 %v2188_v5, %v906_v31  ;;  %v1272_v38 = vmul.f32 %v2188_v5, %v986_v32 }
 0x181   : > { %v908_v35 = vpop.f32.mrf.mxu0  ;;  %v988_v36 = vpop.f32.mrf.mxu1 }
 0x182   : > { %1304 = vst [vmem:[%s2194_s22 + $0xb0] sm:$0xff] %v1240_v37  ;;  %1336 = vst [vmem:[%s2194_s22 + $0x1b0] sm:$0xff] %v1272_v38  ;;  %v1241_v41 = vmul.f32 %v2190_v8, %v908_v35  ;;  %v1273_v42 = vmul.f32 %v2190_v8, %v988_v36 }
 0x183   : > { %v912_v39 = vpop.f32.mrf.mxu0  ;;  %v992_v40 = vpop.f32.mrf.mxu1 }
 0x184   : > { %1305 = vst [vmem:[%s2194_s22 + $0xb8] sm:$0xff] %v1241_v41  ;;  %1337 = vst [vmem:[%s2194_s22 + $0x1b8] sm:$0xff] %v1273_v42  ;;  %v1242_v45 = vmul.f32 %v2188_v5, %v912_v39  ;;  %v1274_v46 = vmul.f32 %v2188_v5, %v992_v40 }
 0x185   : > { %v914_v43 = vpop.f32.mrf.mxu0  ;;  %v994_v44 = vpop.f32.mrf.mxu1 }
 0x186   : > { %1306 = vst [vmem:[%s2194_s22 + $0xc0] sm:$0xff] %v1242_v45  ;;  %1338 = vst [vmem:[%s2194_s22 + $0x1c0] sm:$0xff] %v1274_v46  ;;  %v1243_v49 = vmul.f32 %v2190_v8, %v914_v43  ;;  %v1275_v50 = vmul.f32 %v2190_v8, %v994_v44 }
 0x187   : > { %v916_v47 = vpop.f32.mrf.mxu0  ;;  %v996_v48 = vpop.f32.mrf.mxu1 }
 0x188   : > { %1307 = vst [vmem:[%s2194_s22 + $0xc8] sm:$0xff] %v1243_v49  ;;  %1339 = vst [vmem:[%s2194_s22 + $0x1c8] sm:$0xff] %v1275_v50  ;;  %v1244_v53 = vmul.f32 %v2188_v5, %v916_v47  ;;  %v1276_v54 = vmul.f32 %v2188_v5, %v996_v48 }
 0x189   : > { %v918_v51 = vpop.f32.mrf.mxu0  ;;  %v998_v52 = vpop.f32.mrf.mxu1 }
 0x18a   : > { %1308 = vst [vmem:[%s2194_s22 + $0xd0] sm:$0xff] %v1244_v53  ;;  %1340 = vst [vmem:[%s2194_s22 + $0x1d0] sm:$0xff] %v1276_v54  ;;  %v1245_v57 = vmul.f32 %v2190_v8, %v918_v51  ;;  %v1277_v58 = vmul.f32 %v2190_v8, %v998_v52 }
 0x18b   : > { %v922_v55 = vpop.f32.mrf.mxu0  ;;  %v1002_v56 = vpop.f32.mrf.mxu1 }
 0x18c   : > { %1309 = vst [vmem:[%s2194_s22 + $0xd8] sm:$0xff] %v1245_v57  ;;  %1341 = vst [vmem:[%s2194_s22 + $0x1d8] sm:$0xff] %v1277_v58  ;;  %v1246_v61 = vmul.f32 %v2188_v5, %v922_v55  ;;  %v1278_v62 = vmul.f32 %v2188_v5, %v1002_v56 }
 0x18d   : > { %v924_v59 = vpop.f32.mrf.mxu0  ;;  %v1004_v60 = vpop.f32.mrf.mxu1 }
 0x18e   : > { %1310 = vst [vmem:[%s2194_s22 + $0xe0] sm:$0xff] %v1246_v61  ;;  %1342 = vst [vmem:[%s2194_s22 + $0x1e0] sm:$0xff] %v1278_v62  ;;  %v1247_v1 = vmul.f32 %v2190_v8, %v924_v59  ;;  %v1279_v2 = vmul.f32 %v2190_v8, %v1004_v60 }
 0x18f   : > { %v926_v63 = vpop.f32.mrf.mxu0  ;;  %v1006_v0 = vpop.f32.mrf.mxu1 }
 0x190   : > { %1311 = vst [vmem:[%s2194_s22 + $0xe8] sm:$0xff] %v1247_v1  ;;  %1343 = vst [vmem:[%s2194_s22 + $0x1e8] sm:$0xff] %v1279_v2  ;;  %v1248_v6 = vmul.f32 %v2188_v5, %v926_v63  ;;  %v1280_v7 = vmul.f32 %v2188_v5, %v1006_v0 }
 0x191   : > { %v928_v3 = vpop.f32.mrf.mxu0  ;;  %v1008_v4 = vpop.f32.mrf.mxu1 }
 0x192   : > { %1312 = vst [vmem:[%s2194_s22 + $0xf0] sm:$0xff] %v1248_v6  ;;  %1344 = vst [vmem:[%s2194_s22 + $0x1f0] sm:$0xff] %v1280_v7  ;;  %v1249_v9 = vmul.f32 %v2190_v8, %v928_v3  ;;  %v1281_v10 = vmul.f32 %v2190_v8, %v1008_v4 }
 0x194   : > { %1313 = vst [vmem:[%s2194_s22 + $0xf8] sm:$0xff] %v1249_v9  ;;  %1345 = vst [vmem:[%s2194_s22 + $0x1f8] sm:$0xff] %v1281_v10 }
 0x195   : > { %1894 = shalt.err (!%p1891_p8)
}
 0x196   : > { %s1895_s10 = scalar_lea.hbm %s2321_s4, 8192  ;;  %s1899_s5 = scalar_lea.hbm %s2380_s3, 16384 }
 0x197   : > { %p1896_p12 = scmp.ne.s32.totalorder %s2321_s4, %s1895_s10  ;;  %p1900_p5 = scmp.lt.s32.totalorder %s2321_s4, %s2380_s3 }
 0x198   : > { %p1901_p7 = scmp.lt.s32.totalorder %s1899_s5, %s1895_s10 }
 0x199   : > { %p1897_p13 = pnand %p1896_p12, %p2397_p1 }
 0x19a   : > { %p1902_p11 = por %p1901_p7, %p1900_p5 }
 0x19b   : > { %p1898_p6 = pneg %p1897_p13 }
 0x19d   : > { %p1903_p2 = pnand %p1902_p11, %p1898_p6 }
 0x19f   : > { %1906 = shalt.err (!%p1903_p2)
}
 0x1a0   : > { %s1977_s22 = smov 256   ;;  %s1978_s27 = smov 16  }
 0x1a1   : > { %1628 = dma.vmem_to_hbm [thread:$0]  (%p2397_p1), %s2323_s8, 8192, %s2321_s4, %s1347_s15, %s1977_s22, %s1977_s22, %s1978_s27  }
 0x1a2 PF: > { %s1380_s21 = sand.u32 1, %s1949_s12   ;;  %p2398_p9 = scmp.ne.s32.totalorder %s2390_s26, 0 }
 0x1a3   : > { %p2399_p10 = scmp.ge.s32.totalorder %s1969_s17, 2  ;;  %s1381_s30 = scalar_lea.sflag [#allocation4], %s1380_s21 }
 0x1a5   : > { %p1642_p0 = pnand %p2399_p10, %p2398_p9 }
 0x1a7   : > { %p1643_p4 = pneg %p1642_p0 }
 0x1a9   : > { %1944 = dma.done.wait (%p1643_p4), %s1381_s30, 8192  }
 0x1aa   : > { %1946 = vsyncadd (%p1643_p4), %s1381_s30, 4294959104  ;;  %s20_s17 = sadd.s32 1, %s1969_s17   ;;  %s2400_s12 = smov %s1953_s13 }
 0x1ab   : > { %p17_p3 = scmp.ge.s32.totalorder %s20_s17, 4   ;;  %s2401_s13 = smov %s1957_s14 }
 0x1ac   : > { %s2402_s14 = smov %s2050_s24  ;;  %s2403_s15 = smov %s1965_s16 }
 0x1ad   : > { %s2404_s16 = smov %s2406_s18  ;;  %19 = sbr.rel (!%p17_p3) target bundleno = 7 (0x7), region = 101 }
 0x1b2   :  { %1386 = vsyncpa [#allocation3], 1 }
 0x1b3   :  { %1388 = vsyncpa [#allocation3 + $0x1], 1 }
 0x1b4   :  { %1389 = vsyncpa [#allocation6], 1 }
 0x1b5   :  { %1390 = vsyncpa [#allocation4], 1 }
 0x1b6   :  { %1392 = vsyncpa [#allocation4 + $0x1], 1 }

</bundles_post_ra>
